<compile_context>
chip_gen: v5e
topology: v5e:2x2
jax: 0.10.0
libtpu: 0.0.40
codegen_flags: <defaults>
</compile_context>

<pallas_src>
import jax
import jax.numpy as jnp
from jax.experimental import pallas as pl
from jax.experimental.pallas import tpu as pltpu

LANES = 128
SUBLANES = 8
SUB_ROUND = 32          # round row tiles to 32 -> valid for f32/bf16/int8 tiling
TM_TARGET = 4096        # rows per block: 4096*128*4B = 2 MiB f32 per input block
SMALL_FALLBACK = 65536  # below this many elements, plain jnp is cheaper
MIN_ROWS_2CORE = 1024   # split the reduction across 2 parallel blocks above this


def _round_up(a, b):
    return (a + b - 1) // b * b


def _make_bce_sum_kernel(tm, bpc, full_rows, rem):
    """Kernel producing per-core (8,128) partial sums of BCE-with-logits.

    tm        : rows per block (multiple of 32)
    bpc       : blocks per core (grid extent of the reduction axis)
    full_rows : n_elem // 128  (number of fully-valid rows)
    rem       : n_elem % 128   (valid lanes in the partial row, 0 if none)
    """

    def kernel(x_ref, t_ref, out_ref):
        c = pl.program_id(0)   # parallel axis (per-core partial sum)
        i = pl.program_id(1)   # reduction (arbitrary) axis

        # The (8,128) output block is resident across the reduction axis and
        # acts as this core's accumulator (pure VPU adds, no cross-lane work).
        @pl.when(i == 0)
        def _init():
            out_ref[...] = jnp.zeros_like(out_ref)

        x = x_ref[...].astype(jnp.float32)
        t = t_ref[...].astype(jnp.float32)

        # Numerically stable BCE with logits (matches torch.nn.BCEWithLogitsLoss):
        #   loss = max(x, 0) - x * t + log(1 + exp(-|x|))
        loss = jnp.maximum(x, 0.0) - x * t + jnp.log1p(jnp.exp(-jnp.abs(x)))

        # First global row of this block. NOTE: uses the UNCLAMPED block id;
        # if this block is a clamped duplicate (base_row >= valid rows), the
        # mask below zeroes its entire contribution.
        base_row = (c * bpc + i) * tm

        # Fast path: block lies entirely within the fully-valid rows.
        @pl.when(base_row + tm <= full_rows)
        def _bulk():
            out_ref[...] += loss.reshape(tm // SUBLANES, SUBLANES, LANES).sum(axis=0)

        # Tail path: block overlaps the partial row / zero pad / ragged
        # (unspecified) region -> mask by global row + lane index.
        @pl.when(base_row + tm > full_rows)
        def _tail():
            row = jax.lax.broadcasted_iota(jnp.int32, (tm, LANES), 0) + base_row
            lane = jax.lax.broadcasted_iota(jnp.int32, (tm, LANES), 1)
            valid = (row < full_rows) | ((row == full_rows) & (lane < rem))
            masked = jnp.where(valid, loss, 0.0)
            out_ref[...] += masked.reshape(tm // SUBLANES, SUBLANES, LANES).sum(axis=0)

    return kernel


def cls_loss(output, target, *, force_kernel=False):
    """BCEWithLogitsLoss(output, target) with 'mean' reduction."""
    assert output.shape == target.shape
    n_elem = int(output.size)

    # Tiny tensors: pallas_call fixed cost dominates -> plain jnp.
    if n_elem < SMALL_FALLBACK and not force_kernel:
        x = output.astype(jnp.float32)
        t = target.astype(jnp.float32)
        return jnp.mean(jnp.maximum(x, 0.0) - x * t + jnp.log1p(jnp.exp(-jnp.abs(x))))

    x = output.reshape(-1)
    t = target.reshape(-1)

    full_rows = n_elem // LANES
    rem = n_elem % LANES
    rows = pl.cdiv(n_elem, LANES)

    # Only pad (a copy) in the rare non-lane-multiple case, and only by <128
    # elements; the padded zeros are excluded by the in-kernel mask.
    if rem:
        pad = LANES - rem
        x = jnp.pad(x, (0, pad))
        t = jnp.pad(t, (0, pad))

    # Free, layout-preserving reshape to a lane-dense slab (original dtype).
    x2 = x.reshape(rows, LANES)
    t2 = t.reshape(rows, LANES)

    # --- Tiling -------------------------------------------------------------
    # Split the reduction across a leading parallel axis when there is enough
    # work; pick tm so both halves get equal block counts at <= TM_TARGET rows.
    ncores = 2 if rows >= MIN_ROWS_2CORE else 1
    bpc = pl.cdiv(rows, ncores * TM_TARGET)                       # blocks per core
    tm = min(TM_TARGET, _round_up(pl.cdiv(rows, ncores * bpc), SUB_ROUND))
    nblk_valid = pl.cdiv(rows, tm)                                # blocks that touch data

    if ncores * bpc == nblk_valid:
        in_map = lambda c, i: (c * bpc + i, 0)
    else:
        # At most (ncores*bpc - nblk_valid) <= 1 duplicate block: clamp its DMA
        # to the last real block; the kernel mask zeroes its contribution.
        in_map = lambda c, i: (jnp.minimum(c * bpc + i, nblk_valid - 1), 0)

    out_map = lambda c, i: (c, 0)

    x_bytes = jnp.dtype(x2.dtype).itemsize
    t_bytes = jnp.dtype(t2.dtype).itemsize
    cost = pl.CostEstimate(
        flops=6 * n_elem,
        transcendentals=2 * n_elem,               # exp + log1p per element
        bytes_accessed=n_elem * (x_bytes + t_bytes) + ncores * SUBLANES * LANES * 4,
    )

    partials = pl.pallas_call(
        _make_bce_sum_kernel(tm, bpc, full_rows, rem),
        out_shape=jax.ShapeDtypeStruct((ncores * SUBLANES, LANES), jnp.float32),
        grid_spec=pltpu.PrefetchScalarGridSpec(
            num_scalar_prefetch=0,
            grid=(ncores, bpc),
            in_specs=[
                pl.BlockSpec((tm, LANES), in_map),
                pl.BlockSpec((tm, LANES), in_map),
            ],
            out_specs=pl.BlockSpec((SUBLANES, LANES), out_map),
        ),
        compiler_params=pltpu.CompilerParams(
            dimension_semantics=("parallel", "arbitrary"),
            vmem_limit_bytes=32 * 1024 * 1024,
        ),
        cost_estimate=cost,
    )(x2, t2)

    # Tiny final reduction + mean over the TRUE element count (outside kernel).
    return jnp.sum(partials) / jnp.float32(n_elem)


if __name__ == "__main__":
    key = jax.random.PRNGKey(0)
    k1, k2, k3, k4, k5, k6 = jax.random.split(key, 6)

    def ref_bce(o, t):
        o = o.astype(jnp.float32)
        t = t.astype(jnp.float32)
        return jnp.mean(jnp.maximum(o, 0.0) - o * t + jnp.log1p(jnp.exp(-jnp.abs(o))))

    # 1) Small NCHW logits / binary targets (module-consistent shape); force
    #    the kernel path so the Pallas code is exercised.
    shape1 = (2, 4, 16, 16)
    o1 = jax.random.normal(k1, shape1, dtype=jnp.float32)
    t1 = (jax.random.uniform(k2, shape1) > 0.5).astype(jnp.float32)
    l1 = cls_loss(o1, t1, force_kernel=True)
    jax.block_until_ready(l1)
    r1 = ref_bce(o1, t1)
    assert jnp.allclose(l1, r1, rtol=1e-5, atol=1e-6), (l1, r1)

    # 2) Odd element count (not a multiple of 128) -> exercises the small
    #    lane-pad + masked-tail path.
    shape2 = (3, 5, 17, 13)
    o2 = jax.random.normal(k3, shape2, dtype=jnp.float32)
    t2 = (jax.random.uniform(k4, shape2) > 0.5).astype(jnp.float32)
    l2 = cls_loss(o2, t2, force_kernel=True)
    jax.block_until_ready(l2)
    r2 = ref_bce(o2, t2)
    assert jnp.allclose(l2, r2, rtol=1e-5, atol=1e-6), (l2, r2)

    # 3) Larger input -> default path: kernel with 2-way parallel axis and
    #    bulk (unmasked) blocks.
    shape3 = (4, 8, 64, 64)
    o3 = jax.random.normal(k5, shape3, dtype=jnp.float32)
    t3 = (jax.random.uniform(k6, shape3) > 0.5).astype(jnp.float32)
    l3 = cls_loss(o3, t3)
    jax.block_until_ready(l3)
    r3 = ref_bce(o3, t3)
    assert jnp.allclose(l3, r3, rtol=1e-5, atol=1e-6), (l3, r3)

    print("KERNEL_OK")
</pallas_src>

<mosaic_0001>
module attributes {stable_mosaic.version = 11 : i64} {
  func.func @kernel(%arg0: i32, %arg1: i32, %arg2: memref<32x128xf32, #tpu.memory_space<vmem>>, %arg3: memref<32x128xf32, #tpu.memory_space<vmem>>, %arg4: memref<8x128xf32, #tpu.memory_space<vmem>>) attributes {dimension_semantics = [#tpu.dimension_semantics<parallel>, #tpu.dimension_semantics<arbitrary>], iteration_bounds = array<i64: 1, 1>, scalar_prefetch = 0 : i64, scratch_operands = 0 : i64, tpu.core_type = #tpu.core_type<tc>, window_params = [{transform_indices = @transform_0, window_bounds = array<i64: 32, 128>}, {transform_indices = @transform_1, window_bounds = array<i64: 32, 128>}, {transform_indices = @transform_2, window_bounds = array<i64: 8, 128>}]} {
    %c0_i32 = arith.constant 0 : i32
    %0 = arith.cmpi eq, %arg1, %c0_i32 : i32
    %1 = arith.extui %0 : i1 to i32
    %c0_i32_0 = arith.constant 0 : i32
    %2 = arith.cmpi ne, %1, %c0_i32_0 : i32
    scf.if %2 {
      %cst_10 = arith.constant 0.000000e+00 : f32
      %26 = vector.broadcast %cst_10 : f32 to vector<8x128xf32>
      %c0_11 = arith.constant 0 : index
      %c0_12 = arith.constant 0 : index
      %27 = vector.load %arg4[%c0_11, %c0_12] : memref<8x128xf32, #tpu.memory_space<vmem>>, vector<8x128xf32>
      tpu.vector_store %arg4[%c0_11, %c0_12], %26 {strides = array<i32>} : memref<8x128xf32, #tpu.memory_space<vmem>>, vector<8x128xf32>,
    } else {
    }
    %c0 = arith.constant 0 : index
    %c0_1 = arith.constant 0 : index
    %3 = vector.load %arg2[%c0, %c0_1] : memref<32x128xf32, #tpu.memory_space<vmem>>, vector<32x128xf32>
    %c0_2 = arith.constant 0 : index
    %c0_3 = arith.constant 0 : index
    %4 = vector.load %arg3[%c0_2, %c0_3] : memref<32x128xf32, #tpu.memory_space<vmem>>, vector<32x128xf32>
    %cst = arith.constant 0.000000e+00 : f32
    %5 = vector.broadcast %cst : f32 to vector<32x128xf32>
    %6 = arith.maximumf %3, %5 : vector<32x128xf32>
    %7 = arith.mulf %3, %4 : vector<32x128xf32>
    %8 = arith.subf %6, %7 : vector<32x128xf32>
    %9 = math.absf %3 : vector<32x128xf32>
    %cst_4 = arith.constant 0.000000e+00 : f32
    %10 = vector.broadcast %cst_4 : f32 to vector<32x128xf32>
    %11 = arith.subf %10, %9 : vector<32x128xf32>
    %12 = math.exp %11 : vector<32x128xf32>
    %13 = math.log1p %12 : vector<32x128xf32>
    %14 = arith.addf %8, %13 : vector<32x128xf32>
    %c1_i32 = arith.constant 1 : i32
    %15 = arith.muli %arg0, %c1_i32 : i32
    %16 = arith.addi %15, %arg1 : i32
    %c32_i32 = arith.constant 32 : i32
    %17 = arith.muli %16, %c32_i32 : i32
    %c32_i32_5 = arith.constant 32 : i32
    %18 = arith.addi %17, %c32_i32_5 : i32
    %c16_i32 = arith.constant 16 : i32
    %19 = arith.cmpi sle, %18, %c16_i32 : i32
    %20 = arith.extui %19 : i1 to i32
    %c0_i32_6 = arith.constant 0 : i32
    %21 = arith.cmpi ne, %20, %c0_i32_6 : i32
    scf.if %21 {
      %c0_10 = arith.constant 0 : index
      %c0_11 = arith.constant 0 : index
      %26 = vector.load %arg4[%c0_10, %c0_11] : memref<8x128xf32, #tpu.memory_space<vmem>>, vector<8x128xf32>
      %27 = vector.shape_cast %14 : vector<32x128xf32> to vector<4x8x128xf32>
      %cst_12 = arith.constant dense<0.000000e+00> : vector<8x128xf32>
      %28 = vector.multi_reduction <add>, %27, %cst_12 [0] : vector<4x8x128xf32> to vector<8x128xf32>
      %29 = arith.addf %26, %28 : vector<8x128xf32>
      %c0_13 = arith.constant 0 : index
      %c0_14 = arith.constant 0 : index
      %30 = vector.load %arg4[%c0_13, %c0_14] : memref<8x128xf32, #tpu.memory_space<vmem>>, vector<8x128xf32>
      tpu.vector_store %arg4[%c0_13, %c0_14], %29 {strides = array<i32>} : memref<8x128xf32, #tpu.memory_space<vmem>>, vector<8x128xf32>,
    } else {
    }
    %c32_i32_7 = arith.constant 32 : i32
    %22 = arith.addi %17, %c32_i32_7 : i32
    %c16_i32_8 = arith.constant 16 : i32
    %23 = arith.cmpi sgt, %22, %c16_i32_8 : i32
    %24 = arith.extui %23 : i1 to i32
    %c0_i32_9 = arith.constant 0 : i32
    %25 = arith.cmpi ne, %24, %c0_i32_9 : i32
    scf.if %25 {
      %26 = tpu.iota {dimensions = array<i32: 0>} : vector<32x128xi32>
      %27 = vector.broadcast %17 : i32 to vector<32x128xi32>
      %28 = arith.addi %26, %27 : vector<32x128xi32>
      %29 = tpu.iota {dimensions = array<i32: 1>} : vector<32x128xi32>
      %c16_i32_10 = arith.constant 16 : i32
      %30 = vector.broadcast %c16_i32_10 : i32 to vector<32x128xi32>
      %31 = arith.cmpi slt, %28, %30 : vector<32x128xi32>
      %c16_i32_11 = arith.constant 16 : i32
      %32 = vector.broadcast %c16_i32_11 : i32 to vector<32x128xi32>
      %33 = arith.cmpi eq, %28, %32 : vector<32x128xi32>
      %c0_i32_12 = arith.constant 0 : i32
      %34 = vector.broadcast %c0_i32_12 : i32 to vector<32x128xi32>
      %35 = arith.cmpi slt, %29, %34 : vector<32x128xi32>
      %36 = arith.andi %33, %35 : vector<32x128xi1>
      %37 = arith.ori %31, %36 : vector<32x128xi1>
      %cst_13 = arith.constant 0.000000e+00 : f32
      %38 = vector.broadcast %cst_13 : f32 to vector<32x128xf32>
      %39 = arith.select %37, %14, %38 : vector<32x128xi1>, vector<32x128xf32>
      %c0_14 = arith.constant 0 : index
      %c0_15 = arith.constant 0 : index
      %40 = vector.load %arg4[%c0_14, %c0_15] : memref<8x128xf32, #tpu.memory_space<vmem>>, vector<8x128xf32>
      %41 = vector.shape_cast %39 : vector<32x128xf32> to vector<4x8x128xf32>
      %cst_16 = arith.constant dense<0.000000e+00> : vector<8x128xf32>
      %42 = vector.multi_reduction <add>, %41, %cst_16 [0] : vector<4x8x128xf32> to vector<8x128xf32>
      %43 = arith.addf %40, %42 : vector<8x128xf32>
      %c0_17 = arith.constant 0 : index
      %c0_18 = arith.constant 0 : index
      %44 = vector.load %arg4[%c0_17, %c0_18] : memref<8x128xf32, #tpu.memory_space<vmem>>, vector<8x128xf32>
      tpu.vector_store %arg4[%c0_17, %c0_18], %43 {strides = array<i32>} : memref<8x128xf32, #tpu.memory_space<vmem>>, vector<8x128xf32>,
    } else {
    }
    return
  }
  func.func @transform_0(%arg0: i32, %arg1: i32) -> (i32, i32) {
    %c1_i32 = arith.constant 1 : i32
    %0 = arith.muli %arg0, %c1_i32 : i32
    %1 = arith.addi %0, %arg1 : i32
    %c0_i32 = arith.constant 0 : i32
    %c0_i32_0 = arith.constant 0 : i32
    return %1, %c0_i32 : i32, i32
  }
  func.func @transform_1(%arg0: i32, %arg1: i32) -> (i32, i32) {
    %c1_i32 = arith.constant 1 : i32
    %0 = arith.muli %arg0, %c1_i32 : i32
    %1 = arith.addi %0, %arg1 : i32
    %c0_i32 = arith.constant 0 : i32
    %c0_i32_0 = arith.constant 0 : i32
    return %1, %c0_i32 : i32, i32
  }
  func.func @transform_2(%arg0: i32, %arg1: i32) -> (i32, i32) {
    %c0_i32 = arith.constant 0 : i32
    %c0_i32_0 = arith.constant 0 : i32
    return %arg0, %c0_i32 : i32, i32
  }
}

</mosaic_0001>

<bundles_post_ra>
// kernel: tpu_custom_call.1
= control target key start
LH: loop header
LB: loop body
LE: loop exit
PB: predicated region body
PF: predicated region fallthrough
CT: control target
= control target key end

     0   :  { %7 = vsyncpa [#allocation3], 0  ;;  %s346_s0 = inlined_call_operand.hbm [shape: f32[16,128], index: 0, kind: input, shape index: {}]   ;;  %s347_s1 = inlined_call_operand.hbm [shape: f32[16,128], index: 1, kind: input, shape index: {}]   ;;  %s348_s2 = inlined_call_operand.hbm [shape: f32[8,128], index: 2, kind: output, shape index: {}]  }
   0x1   :  { %8 = vsyncpa [#allocation6], 0 }
   0x2   :  { %9 = vsyncpa [#allocation4], 0 }
   0x3   :  { %18 = vsyncadd [#allocation3], 256  ;;  %s23_s11 = sshll.u32 %s346_s0, 4  ;;  %s317_s12 = smov [#allocation2]   ;;  %s24_s11 = int_to_ptr.hbm [resolvable:$true] %s23_s11 }
   0x4   :  { %s25_s13 = sshll.u32 %s317_s12, 4  ;;  %s318_s14 = smov 128   ;;  %s26_s13 = int_to_ptr.vmem [resolvable:$true] %s25_s13 }
   0x5   :  { %s319_s15 = smov 8  }
   0x6   :  { %31 = dma.hbm_to_vmem [thread:$0]  %s24_s11, 256, %s26_s13, [#allocation3], %s318_s14, %s318_s14, %s319_s15  }
   0x7   :  { %40 = vsyncadd [#allocation6], 256  ;;  %s45_s18 = sshll.u32 %s347_s1, 4  ;;  %s320_s19 = smov [#allocation5]   ;;  %s46_s18 = int_to_ptr.hbm [resolvable:$true] %s45_s18 }
   0x8   :  { %s47_s20 = sshll.u32 %s320_s19, 4  ;;  %s48_s20 = int_to_ptr.vmem [resolvable:$true] %s47_s20 }
   0x9   :  { %53 = dma.hbm_to_vmem [thread:$0]  %s46_s18, 256, %s48_s20, [#allocation6], %s318_s14, %s318_s14, %s319_s15  }
   0xa   :  { %311 = dma.done.wait [#allocation3], 512  }
   0xb   :  { %312 = vsyncadd [#allocation3], 4294966784 }
   0xc   :  { %313 = dma.done.wait [#allocation6], 512  }
   0xd   :  { %314 = vsyncadd [#allocation6], 4294966784  ;;  %v75_v0 = vld [vmem:[#allocation2] sm:$0xff]  ;;  %v76_v1 = vld [vmem:[#allocation2 + $0x8] sm:$0xff]  ;;  %s321_s0 = smov [#allocation7]   ;;  %s214_s23 = sshll.u32 %s348_s2, 4  ;;  %s215_s23 = int_to_ptr.hbm [resolvable:$true] %s214_s23 }
   0xe   :  { %v95_v2 = vand.u32 2147483647, %v75_v0  ;;  %v96_v3 = vand.u32 2147483647, %v76_v1  ;;  %v79_v12 = vld [vmem:[#allocation5] sm:$0xff]  ;;  %v80_v15 = vld [vmem:[#allocation5 + $0x8] sm:$0xff] }
   0xf   :  { %v83_v17 = vmax.f32 %v75_v0, 0.0  ;;  %v87_v18 = vmul.f32 %v79_v12, %v75_v0  ;;  %v84_v21 = vmax.f32 %v76_v1, 0.0  ;;  %v88_v22 = vmul.f32 %v80_v15, %v76_v1  ;;  %s212_s1 = sshll.u32 %s321_s0, 4  ;;  %s213_s1 = int_to_ptr.vmem [resolvable:$true] %s212_s1 }
  0x10   :  { %v99_v4 = vsub.f32 0.0, %v95_v2  ;;  %v100_v5 = vsub.f32 0.0, %v96_v3 }
  0x11   :  { %v91_v26 = vsub.f32 %v83_v17, %v87_v18  ;;  %v92_v29 = vsub.f32 %v84_v21, %v88_v22 }
  0x12   :  { %v103_v6 = vmul.f32 1.442695, %v99_v4  ;;  %v105_v7 = vmul.f32 1.442695, %v100_v5 }
  0x14   :  { %231 = vpow2.f32 %v103_v6 }
  0x15   :  { %233 = vpow2.f32 %v105_v7 }
  0x1a   :  { %v232_v8 = vpop.eup %231 }
  0x1b   :  { %v234_v9 = vpop.eup %233  ;;  %v111_v10 = vadd.f32 1.0, %v232_v8  ;;  %v114_v11 = vmul.f32 -0.5, %v232_v8  ;;  %v117_v19 = vand.u32 2147483647, %v232_v8 }
  0x1c   :  { %v120_v13 = vadd.f32 1.0, %v234_v9  ;;  %v123_v14 = vmul.f32 -0.5, %v234_v9  ;;  %v126_v23 = vand.u32 2147483647, %v234_v9 }
  0x1d   :  { %235 = vlog2.f32 %v111_v10  ;;  %v115_v16 = vadd.f32 1.0, %v114_v11  ;;  %vm118_vm0 = vcmp.lt.f32.partialorder %v117_v19, 0.0004427343 }
  0x1e   :  { %237 = vlog2.f32 %v120_v13  ;;  %v124_v20 = vadd.f32 1.0, %v123_v14  ;;  %vm127_vm1 = vcmp.lt.f32.partialorder %v126_v23, 0.0004427343 }
  0x1f   :  { %v116_v24 = vmul.f32 %v232_v8, %v115_v16 }
  0x20   :  { %v125_v27 = vmul.f32 %v234_v9, %v124_v20 }
  0x23   :  { %v236_v25 = vpop.eup %235 }
  0x24   :  { %v238_v28 = vpop.eup %237  ;;  %v113_v30 = vmul.f32 0.6931472, %v236_v25 }
  0x25   :  { %v122_v31 = vmul.f32 0.6931472, %v238_v28 }
  0x26   :  { %v119_v32 = vsel %vm118_vm0, %v116_v24, %v113_v30 }
  0x27   :  { %v128_v33 = vsel %vm127_vm1, %v125_v27, %v122_v31  ;;  %v147_v34 = vadd.f32 %v119_v32, %v91_v26 }
  0x28   :  { %v148_v35 = vadd.f32 %v128_v33, %v92_v29 }
  0x2a   :  { %v202_v36 = vadd.f32 %v148_v35, %v147_v34 }
  0x2c   :  { %206 = vst [vmem:[#allocation7] sm:$0xff] %v202_v36 }
  0x2d   :  { %217 = dma.vmem_to_hbm [thread:$0]  %s213_s1, 128, %s215_s23, [#allocation4]  }
  0x2e   :  { %315 = dma.done.wait [#allocation4], 128  }
  0x2f   :  { %316 = vsyncadd [#allocation4], 4294967168 }
  0x30   :  { %222 = vsyncpa [#allocation3], 1 }
  0x31   :  { %223 = vsyncpa [#allocation6], 1 }
  0x32   :  { %224 = vsyncpa [#allocation4], 1 }

</bundles_post_ra>
